<compile_context>
chip_gen: v5e
topology: v5e:2x2
jax: 0.10.0
libtpu: 0.0.40
codegen_flags: <defaults>
</compile_context>

<pallas_src>
import functools

import jax
import jax.numpy as jnp
import numpy as np
from jax.experimental import pallas as pl
from jax.experimental.pallas import tpu as pltpu

BN_EPS = 1e-5
_VMEM_CAP = 64 * 1024 * 1024  # fits every generation (v7x has 64 MiB per TC)


def _vmem_limit(nbytes):
    return int(min(max(2 * nbytes, 32 << 20), _VMEM_CAP))


def _bn_relu(h, gb_ref):
    """Training-mode BatchNorm1d (biased var, one-pass stats) + ReLU, fused affine."""
    m = h.shape[0]
    inv_m = 1.0 / m
    s = jnp.sum(h, axis=0, keepdims=True)
    sq = jnp.sum(h * h, axis=0, keepdims=True)
    mean = s * inv_m
    var = jnp.maximum(sq * inv_m - mean * mean, 0.0)   # clamp: one-pass var can dip < 0
    gamma = gb_ref[0:1, :]
    beta = gb_ref[1:2, :]
    a = gamma * jax.lax.rsqrt(var + BN_EPS)
    return jnp.maximum(a * h + (beta - a * mean), 0.0)


def _layers12_kernel(x_ref, w1_ref, gb1_ref, w2_ref, gb2_ref, h2_ref):
    # Layer 1: Conv1d(k=1) == (M, Dp) @ (Dp, C1) on the MXU (biases dropped: no-op
    # before training-mode BN), then fused one-pass BN + ReLU.
    h = jnp.dot(x_ref[...], w1_ref[...], preferred_element_type=jnp.float32)   # (M, C1)
    h = _bn_relu(h, gb1_ref)
    # Layer 2.
    h = jnp.dot(h, w2_ref[...], preferred_element_type=jnp.float32)            # (M, C2)
    h2_ref[...] = _bn_relu(h, gb2_ref)


def _layer3_kernel(h2_ref, w3_ref, gb3_ref, out_ref, *, batch, npoints):
    # Layer 3 for one tile of output channels (activation_last=False -> no ReLU).
    h3 = jnp.dot(h2_ref[...], w3_ref[...], preferred_element_type=jnp.float32)  # (M, tn)

    m = batch * npoints
    inv_m = 1.0 / m
    s = jnp.sum(h3, axis=0, keepdims=True)
    sq = jnp.sum(h3 * h3, axis=0, keepdims=True)
    mean = s * inv_m
    var = jnp.maximum(sq * inv_m - mean * mean, 0.0)
    gamma = gb3_ref[0:1, :]
    beta = gb3_ref[1:2, :]
    a = gamma * jax.lax.rsqrt(var + BN_EPS)            # (1, tn)
    c = beta - a * mean                                # (1, tn)

    # Fold the BN affine past the global max-pool: max/min of the RAW h3 over
    # points, then y = a * (max if a>=0 else min) + c per channel.
    h3 = h3.reshape(batch, npoints, h3.shape[-1])
    mx = jnp.max(h3, axis=1)                           # (B, tn)
    mn = jnp.min(h3, axis=1)                           # (B, tn)
    out_ref[...] = a * jnp.where(a >= 0.0, mx, mn) + c


def _pick_tile_n(feat_size):
    if feat_size <= 512:
        return feat_size
    if feat_size % 256 == 0:   # 256 matches the 256-wide MXU on v6e/v7x
        return 256
    if feat_size % 128 == 0:
        return 128
    return feat_size


def pointnet_feature_extractor(x, params, *, feat_size, tile_n=None):
    """x: (B, N, D) float32.  Returns (B, feat_size) float32."""
    B, N, D = x.shape
    M = B * N
    (w1, _b1, g1, be1), (w2, _b2, g2, be2), (w3, _b3, g3, be3) = params
    C1 = w1.shape[1]
    C2 = w2.shape[1]
    assert w3.shape[1] == feat_size

    # Conv1d biases (_b1.._b3) are mathematical no-ops before training-mode BN:
    # dropped from the kernel (fewer DMAs, fewer VPU passes).

    # Pad the tiny input-channel dim (D=3) up to 8 sublanes with zeros (math-neutral).
    Dp = 8
    x2d = jnp.pad(x.reshape(M, D).astype(jnp.float32), ((0, 0), (0, Dp - D)))
    w1p = jnp.pad(w1.astype(jnp.float32), ((0, Dp - D), (0, 0)))

    # Pack (gamma, beta) per layer into a single (2, C) array -> one DMA each.
    gb1 = jnp.concatenate([g1, be1], axis=0)           # (2, C1)
    gb2 = jnp.concatenate([g2, be2], axis=0)           # (2, C2)
    gb3 = jnp.concatenate([g3, be3], axis=0)           # (2, feat_size)

    # ---- call 1: layers 1-2 (small channel dims), h2 written back to HBM ----
    bytes_a = 4 * (M * 128 + Dp * C1 + C1 * C2 + 8 * (C1 + C2)
                   + 3 * M * C1 + 3 * M * C2)
    h2 = pl.pallas_call(
        _layers12_kernel,
        out_shape=jax.ShapeDtypeStruct((M, C2), jnp.float32),
        compiler_params=pltpu.CompilerParams(
            vmem_limit_bytes=_vmem_limit(bytes_a)),
    )(x2d, w1p, gb1, w2, gb2)

    # ---- call 2: layer 3, tiled over output channels, megacore-parallel ----
    if tile_n is None:
        tile_n = _pick_tile_n(feat_size)
    assert feat_size % tile_n == 0
    grid = (feat_size // tile_n,)

    bytes_b = 4 * (M * C2                                # h2 block (constant index -> loaded once)
                   + 2 * (C2 * tile_n + 16 * tile_n)      # double-buffered w3 / gb3 / out tiles
                   + 3 * M * tile_n)                      # h3 + elementwise temporaries
    kernel_b = functools.partial(_layer3_kernel, batch=B, npoints=N)

    out = pl.pallas_call(
        kernel_b,
        out_shape=jax.ShapeDtypeStruct((B, feat_size), jnp.float32),
        grid=grid,
        in_specs=[
            pl.BlockSpec((M, C2), lambda g: (0, 0)),       # h2 (same block every step)
            pl.BlockSpec((C2, tile_n), lambda g: (0, g)),  # w3 tile
            pl.BlockSpec((2, tile_n), lambda g: (0, g)),   # packed gamma/beta tile
        ],
        out_specs=pl.BlockSpec((B, tile_n), lambda g: (0, g)),
        compiler_params=pltpu.CompilerParams(
            dimension_semantics=("parallel",),             # no cross-step carry -> megacore OK
            vmem_limit_bytes=_vmem_limit(bytes_b)),
    )(h2, w3, gb3)
    return out


def make_params(key, in_channels, layer_dims, feat_size):
    dims = [in_channels] + list(layer_dims) + [feat_size]
    params = []
    for i in range(len(dims) - 1):
        cin, cout = dims[i], dims[i + 1]
        key, k1, k2, k3, k4 = jax.random.split(key, 5)
        w = 0.1 * jax.random.normal(k1, (cin, cout), jnp.float32)          # Conv1d(k=1) weight^T
        b = 0.05 * jax.random.normal(k2, (1, cout), jnp.float32)           # Conv1d bias
        gamma = 1.0 + 0.1 * jax.random.normal(k3, (1, cout), jnp.float32)  # BN weight
        beta = 0.1 * jax.random.normal(k4, (1, cout), jnp.float32)         # BN bias
        params.append((w, b, gamma, beta))
    return params


def reference_forward(x, params):
    """Pure-JAX mirror of the torch forward (training-mode BN, ReLU, global max).
    Keeps the Conv1d biases to verify they are indeed redundant before BN."""
    B, N, D = x.shape
    h = x.reshape(B * N, D).astype(jnp.float32)
    n_layers = len(params)
    for idx, (w, b, g, be) in enumerate(params):
        h = h @ w + b
        mean = jnp.mean(h, axis=0, keepdims=True)
        var = jnp.mean((h - mean) ** 2, axis=0, keepdims=True)
        h = (h - mean) / jnp.sqrt(var + BN_EPS) * g + be
        if idx < n_layers - 1:           # activation_last=False
            h = jnp.maximum(h, 0.0)
    h = h.reshape(B, N, -1)
    return jnp.max(h, axis=1)            # global_feat=True


if __name__ == "__main__":
    # Small, module-consistent shapes: pointcloud (B, N, D), module defaults for dims.
    B, N, D = 2, 128, 3
    layer_dims = [64, 128]
    feat_size = 1024

    key = jax.random.PRNGKey(0)
    kx, kp = jax.random.split(key)
    x = jax.random.normal(kx, (B, N, D), jnp.float32)
    params = make_params(kp, D, layer_dims, feat_size)

    out = pointnet_feature_extractor(x, params, feat_size=feat_size)
    out = jax.block_until_ready(out)

    ref = reference_forward(x, params)
    assert out.shape == (B, feat_size)
    np.testing.assert_allclose(np.asarray(out), np.asarray(ref), rtol=1e-4, atol=1e-4)

    print("KERNEL_OK")
</pallas_src>

<mosaic_0001>
module attributes {stable_mosaic.version = 11 : i64} {
  func.func @_layers12_kernel(%arg0: memref<256x8xf32, #tpu.memory_space<vmem>>, %arg1: memref<8x64xf32, #tpu.memory_space<vmem>>, %arg2: memref<2x64xf32, #tpu.memory_space<vmem>>, %arg3: memref<64x128xf32, #tpu.memory_space<vmem>>, %arg4: memref<2x128xf32, #tpu.memory_space<vmem>>, %arg5: memref<256x128xf32, #tpu.memory_space<vmem>>) attributes {dimension_semantics = [], scalar_prefetch = 0 : i64, scratch_operands = 0 : i64, tpu.core_type = #tpu.core_type<tc>} {
    %c0 = arith.constant 0 : index
    %c0_0 = arith.constant 0 : index
    %0 = vector.load %arg0[%c0, %c0_0] : memref<256x8xf32, #tpu.memory_space<vmem>>, vector<256x8xf32>
    %c0_1 = arith.constant 0 : index
    %c0_2 = arith.constant 0 : index
    %1 = vector.load %arg1[%c0_1, %c0_2] : memref<8x64xf32, #tpu.memory_space<vmem>>, vector<8x64xf32>
    %cst = arith.constant dense<0.000000e+00> : vector<256x64xf32>
    %2 = tpu.matmul %0, %1, %cst {dimension_numbers = #tpu.dot_dimension_numbers<[1], [0], [0], [1], [0, 0, 1, 1], [], []>} : vector<256x8xf32>, vector<8x64xf32>, vector<256x64xf32> -> vector<256x64xf32>
    %cst_3 = arith.constant dense<0.000000e+00> : vector<64xf32>
    %3 = vector.multi_reduction <add>, %2, %cst_3 [0] : vector<256x64xf32> to vector<64xf32>
    %4 = vector.shape_cast %3 : vector<64xf32> to vector<1x64xf32>
    %5 = arith.mulf %2, %2 : vector<256x64xf32>
    %cst_4 = arith.constant dense<0.000000e+00> : vector<64xf32>
    %6 = vector.multi_reduction <add>, %5, %cst_4 [0] : vector<256x64xf32> to vector<64xf32>
    %7 = vector.shape_cast %6 : vector<64xf32> to vector<1x64xf32>
    %cst_5 = arith.constant 3.906250e-03 : f32
    %8 = vector.broadcast %cst_5 : f32 to vector<1x64xf32>
    %9 = arith.mulf %4, %8 : vector<1x64xf32>
    %cst_6 = arith.constant 3.906250e-03 : f32
    %10 = vector.broadcast %cst_6 : f32 to vector<1x64xf32>
    %11 = arith.mulf %7, %10 : vector<1x64xf32>
    %12 = arith.mulf %9, %9 : vector<1x64xf32>
    %13 = arith.subf %11, %12 : vector<1x64xf32>
    %cst_7 = arith.constant 0.000000e+00 : f32
    %14 = vector.broadcast %cst_7 : f32 to vector<1x64xf32>
    %15 = arith.maximumf %13, %14 : vector<1x64xf32>
    %c0_8 = arith.constant 0 : index
    %c0_9 = arith.constant 0 : index
    %16 = vector.load %arg2[%c0_8, %c0_9] : memref<2x64xf32, #tpu.memory_space<vmem>>, vector<1x64xf32>
    %c1 = arith.constant 1 : index
    %c0_10 = arith.constant 0 : index
    %17 = vector.load %arg2[%c1, %c0_10] : memref<2x64xf32, #tpu.memory_space<vmem>>, vector<1x64xf32>
    %cst_11 = arith.constant 9.99999974E-6 : f32
    %18 = vector.broadcast %cst_11 : f32 to vector<1x64xf32>
    %19 = arith.addf %15, %18 : vector<1x64xf32>
    %20 = math.rsqrt %19 : vector<1x64xf32>
    %21 = arith.mulf %16, %20 : vector<1x64xf32>
    %22 = vector.broadcast %21 : vector<1x64xf32> to vector<256x64xf32>
    %23 = arith.mulf %22, %2 : vector<256x64xf32>
    %24 = arith.mulf %21, %9 : vector<1x64xf32>
    %25 = arith.subf %17, %24 : vector<1x64xf32>
    %26 = vector.broadcast %25 : vector<1x64xf32> to vector<256x64xf32>
    %27 = arith.addf %23, %26 : vector<256x64xf32>
    %cst_12 = arith.constant 0.000000e+00 : f32
    %28 = vector.broadcast %cst_12 : f32 to vector<256x64xf32>
    %29 = arith.maximumf %27, %28 : vector<256x64xf32>
    %c0_13 = arith.constant 0 : index
    %c0_14 = arith.constant 0 : index
    %30 = vector.load %arg3[%c0_13, %c0_14] : memref<64x128xf32, #tpu.memory_space<vmem>>, vector<64x128xf32>
    %cst_15 = arith.constant dense<0.000000e+00> : vector<256x128xf32>
    %31 = tpu.matmul %29, %30, %cst_15 {dimension_numbers = #tpu.dot_dimension_numbers<[1], [0], [0], [1], [0, 0, 1, 1], [], []>} : vector<256x64xf32>, vector<64x128xf32>, vector<256x128xf32> -> vector<256x128xf32>
    %cst_16 = arith.constant dense<0.000000e+00> : vector<128xf32>
    %32 = vector.multi_reduction <add>, %31, %cst_16 [0] : vector<256x128xf32> to vector<128xf32>
    %33 = vector.shape_cast %32 : vector<128xf32> to vector<1x128xf32>
    %34 = arith.mulf %31, %31 : vector<256x128xf32>
    %cst_17 = arith.constant dense<0.000000e+00> : vector<128xf32>
    %35 = vector.multi_reduction <add>, %34, %cst_17 [0] : vector<256x128xf32> to vector<128xf32>
    %36 = vector.shape_cast %35 : vector<128xf32> to vector<1x128xf32>
    %cst_18 = arith.constant 3.906250e-03 : f32
    %37 = vector.broadcast %cst_18 : f32 to vector<1x128xf32>
    %38 = arith.mulf %33, %37 : vector<1x128xf32>
    %cst_19 = arith.constant 3.906250e-03 : f32
    %39 = vector.broadcast %cst_19 : f32 to vector<1x128xf32>
    %40 = arith.mulf %36, %39 : vector<1x128xf32>
    %41 = arith.mulf %38, %38 : vector<1x128xf32>
    %42 = arith.subf %40, %41 : vector<1x128xf32>
    %cst_20 = arith.constant 0.000000e+00 : f32
    %43 = vector.broadcast %cst_20 : f32 to vector<1x128xf32>
    %44 = arith.maximumf %42, %43 : vector<1x128xf32>
    %c0_21 = arith.constant 0 : index
    %c0_22 = arith.constant 0 : index
    %45 = vector.load %arg4[%c0_21, %c0_22] : memref<2x128xf32, #tpu.memory_space<vmem>>, vector<1x128xf32>
    %c1_23 = arith.constant 1 : index
    %c0_24 = arith.constant 0 : index
    %46 = vector.load %arg4[%c1_23, %c0_24] : memref<2x128xf32, #tpu.memory_space<vmem>>, vector<1x128xf32>
    %cst_25 = arith.constant 9.99999974E-6 : f32
    %47 = vector.broadcast %cst_25 : f32 to vector<1x128xf32>
    %48 = arith.addf %44, %47 : vector<1x128xf32>
    %49 = math.rsqrt %48 : vector<1x128xf32>
    %50 = arith.mulf %45, %49 : vector<1x128xf32>
    %51 = vector.broadcast %50 : vector<1x128xf32> to vector<256x128xf32>
    %52 = arith.mulf %51, %31 : vector<256x128xf32>
    %53 = arith.mulf %50, %38 : vector<1x128xf32>
    %54 = arith.subf %46, %53 : vector<1x128xf32>
    %55 = vector.broadcast %54 : vector<1x128xf32> to vector<256x128xf32>
    %56 = arith.addf %52, %55 : vector<256x128xf32>
    %cst_26 = arith.constant 0.000000e+00 : f32
    %57 = vector.broadcast %cst_26 : f32 to vector<256x128xf32>
    %58 = arith.maximumf %56, %57 : vector<256x128xf32>
    %c0_27 = arith.constant 0 : index
    %c0_28 = arith.constant 0 : index
    %59 = vector.load %arg5[%c0_27, %c0_28] : memref<256x128xf32, #tpu.memory_space<vmem>>, vector<256x128xf32>
    tpu.vector_store %arg5[%c0_27, %c0_28], %58 {strides = array<i32>} : memref<256x128xf32, #tpu.memory_space<vmem>>, vector<256x128xf32>,
    return
  }
}

</mosaic_0001>

<bundles_post_ra>
// kernel: tpu_custom_call.1
= control target key start
LH: loop header
LB: loop body
LE: loop exit
PB: predicated region body
PF: predicated region fallthrough
CT: control target
= control target key end

     0   :  { %vm54_vm0 = vcmask 64512   ;;  %s2018_s0 = inlined_call_operand.vmem [shape: f32[256,8], index: 0, kind: input, shape index: {}]   ;;  %s2019_s1 = inlined_call_operand.vmem [shape: f32[8,64], index: 1, kind: input, shape index: {}]   ;;  %s2020_s2 = inlined_call_operand.vmem [shape: f32[2,64], index: 2, kind: input, shape index: {}]   ;;  %s2021_s3 = inlined_call_operand.vmem [shape: f32[64,128], index: 3, kind: input, shape index: {}]   ;;  %s2022_s4 = inlined_call_operand.vmem [shape: f32[2,128], index: 4, kind: input, shape index: {}]   ;;  %s2023_s5 = inlined_call_operand.hbm [shape: f32[256,128], index: 5, kind: output, shape index: {}]  }
   0x1   :  { %v53_v0 = vld [vmem:[%s2019_s1] sm:$0xff] }
   0x2   :  { %v21_v1 = vld [vmem:[%s2018_s0] sm:$0xff]  ;;  %166 = vmatpush.msra.mxu0 %v53_v0  ;;  %1110 = vmatpush.msra.mxu3 %v53_v0 }
   0x3   :  { %1046 = vmatmul.msk.f32.vlgmr.msra.gmra.mxu0 %vm54_vm0, %v21_v1 }
   0x4   :  { %10 = vsyncpa [#allocation3], 0  ;;  %v22_v2 = vld [vmem:[%s2018_s0 + $0x8] sm:$0xff]  ;;  %v23_v4 = vld [vmem:[%s2018_s0 + $0x10] sm:$0xff]  ;;  %vm264_vm1 = vcmask 523264   ;;  %s1034_s29 = sshll.u32 %s2023_s5, 4  ;;  %s1035_s29 = int_to_ptr.hbm [resolvable:$true] %s1034_s29 }
   0x5   :  { %v38_v3 = vld [vmem:[%s2018_s0 + $0x88] sm:$0xff]  ;;  %v39_v5 = vld [vmem:[%s2018_s0 + $0x90] sm:$0xff]  ;;  %v24_v6 = vld [vmem:[%s2018_s0 + $0x18] sm:$0xff]  ;;  %s1161_s30 = smov 128  }
   0x6   :  { %1063 = vmatmul.msk.f32.vlgmr.msra.gmra.mxu3 %vm54_vm0, %v38_v3  ;;  %v40_v7 = vld [vmem:[%s2018_s0 + $0x98] sm:$0xff]  ;;  %v25_v8 = vld [vmem:[%s2018_s0 + $0x20] sm:$0xff]  ;;  %v26_v10 = vld [vmem:[%s2018_s0 + $0x28] sm:$0xff] }
   0x7   :  { %v41_v9 = vld [vmem:[%s2018_s0 + $0xa0] sm:$0xff]  ;;  %v42_v11 = vld [vmem:[%s2018_s0 + $0xa8] sm:$0xff]  ;;  %v27_v12 = vld [vmem:[%s2018_s0 + $0x30] sm:$0xff] }
   0x8   :  { %v43_v13 = vld [vmem:[%s2018_s0 + $0xb0] sm:$0xff]  ;;  %v28_v14 = vld [vmem:[%s2018_s0 + $0x38] sm:$0xff]  ;;  %v29_v16 = vld [vmem:[%s2018_s0 + $0x40] sm:$0xff] }
   0x9   :  { %v44_v15 = vld [vmem:[%s2018_s0 + $0xb8] sm:$0xff]  ;;  %v45_v17 = vld [vmem:[%s2018_s0 + $0xc0] sm:$0xff]  ;;  %v30_v18 = vld [vmem:[%s2018_s0 + $0x48] sm:$0xff] }
   0xa   :  { %v46_v19 = vld [vmem:[%s2018_s0 + $0xc8] sm:$0xff]  ;;  %v31_v20 = vld [vmem:[%s2018_s0 + $0x50] sm:$0xff]  ;;  %v32_v22 = vld [vmem:[%s2018_s0 + $0x58] sm:$0xff] }
   0xb   :  { %1047 = vmatmul.msk.f32.gmra.mxu0 %vm54_vm0, %v22_v2  ;;  %v47_v21 = vld [vmem:[%s2018_s0 + $0xd0] sm:$0xff]  ;;  %v48_v23 = vld [vmem:[%s2018_s0 + $0xd8] sm:$0xff]  ;;  %v33_v24 = vld [vmem:[%s2018_s0 + $0x60] sm:$0xff] }
   0xc   :  { %v49_v25 = vld [vmem:[%s2018_s0 + $0xe0] sm:$0xff]  ;;  %v34_v26 = vld [vmem:[%s2018_s0 + $0x68] sm:$0xff]  ;;  %v35_v28 = vld [vmem:[%s2018_s0 + $0x70] sm:$0xff] }
   0xd   :  { %v50_v27 = vld [vmem:[%s2018_s0 + $0xe8] sm:$0xff]  ;;  %v51_v29 = vld [vmem:[%s2018_s0 + $0xf0] sm:$0xff]  ;;  %v36_v30 = vld [vmem:[%s2018_s0 + $0x78] sm:$0xff] }
   0xe   :  { %1064 = vmatmul.msk.f32.gmra.mxu3 %vm54_vm0, %v39_v5  ;;  %v52_v31 = vld [vmem:[%s2018_s0 + $0xf8] sm:$0xff]  ;;  %v37_v33 = vld [vmem:[%s2018_s0 + $0x80] sm:$0xff]  ;;  %s1162_s0 = smov 8  }
  0x13   :  { %1048 = vmatmul.msk.f32.gmra.mxu0 %vm54_vm0, %v23_v4 }
  0x16   :  { %1065 = vmatmul.msk.f32.gmra.mxu3 %vm54_vm0, %v40_v7 }
  0x1b   :  { %1049 = vmatmul.msk.f32.gmra.mxu0 %vm54_vm0, %v24_v6 }
  0x1e   :  { %1066 = vmatmul.msk.f32.gmra.mxu3 %vm54_vm0, %v41_v9 }
  0x23   :  { %1050 = vmatmul.msk.f32.gmra.mxu0 %vm54_vm0, %v25_v8 }
  0x26   :  { %1067 = vmatmul.msk.f32.gmra.mxu3 %vm54_vm0, %v42_v11 }
  0x2b   :  { %1051 = vmatmul.msk.f32.gmra.mxu0 %vm54_vm0, %v26_v10 }
  0x2e   :  { %1068 = vmatmul.msk.f32.gmra.mxu3 %vm54_vm0, %v43_v13 }
  0x33   :  { %1052 = vmatmul.msk.f32.gmra.mxu0 %vm54_vm0, %v27_v12 }
  0x36   :  { %1069 = vmatmul.msk.f32.gmra.mxu3 %vm54_vm0, %v44_v15 }
  0x3b   :  { %1053 = vmatmul.msk.f32.gmra.mxu0 %vm54_vm0, %v28_v14 }
  0x3e   :  { %1070 = vmatmul.msk.f32.gmra.mxu3 %vm54_vm0, %v45_v17 }
  0x43   :  { %1054 = vmatmul.msk.f32.gmra.mxu0 %vm54_vm0, %v29_v16 }
  0x46   :  { %1071 = vmatmul.msk.f32.gmra.mxu3 %vm54_vm0, %v46_v19 }
  0x4b   :  { %1055 = vmatmul.msk.f32.gmra.mxu0 %vm54_vm0, %v30_v18 }
  0x4e   :  { %1072 = vmatmul.msk.f32.gmra.mxu3 %vm54_vm0, %v47_v21 }
  0x53   :  { %1056 = vmatmul.msk.f32.gmra.mxu0 %vm54_vm0, %v31_v20 }
  0x56   :  { %1073 = vmatmul.msk.f32.gmra.mxu3 %vm54_vm0, %v48_v23 }
  0x5b   :  { %1057 = vmatmul.msk.f32.gmra.mxu0 %vm54_vm0, %v32_v22 }
  0x5e   :  { %1074 = vmatmul.msk.f32.gmra.mxu3 %vm54_vm0, %v49_v25 }
  0x63   :  { %1058 = vmatmul.msk.f32.gmra.mxu0 %vm54_vm0, %v33_v24 }
  0x66   :  { %1075 = vmatmul.msk.f32.gmra.mxu3 %vm54_vm0, %v50_v27 }
  0x6b   :  { %1059 = vmatmul.msk.f32.gmra.mxu0 %vm54_vm0, %v34_v26 }
  0x6e   :  { %1076 = vmatmul.msk.f32.gmra.mxu3 %vm54_vm0, %v51_v29 }
  0x73   :  { %1060 = vmatmul.msk.f32.gmra.mxu0 %vm54_vm0, %v35_v28 }
  0x76   :  { %1077 = vmatmul.msk.f32.gmra.mxu3 %vm54_vm0, %v52_v31 }
  0x7b   :  { %1061 = vmatmul.msk.f32.gmra.mxu0 %vm54_vm0, %v36_v30 }
  0x80   :  { %v1320_v32 = vpop.f32.mrf.mxu0 }
  0x81   :  { %v334_v56 = vmul.f32 %v1320_v32, %v1320_v32  ;;  %v265_v59 = vsel %vm264_vm1, %v1320_v32, 0.0 }
  0x83   :  { %1062 = vmatmul.msk.f32.gmra.mxu0 %vm54_vm0, %v37_v33  ;;  %v366_v0 = vsel %vm264_vm1, %v334_v56, 0.0 }
  0x88   :  { %v1326_v34 = vpop.f32.mrf.mxu0 }
  0x89   :  { %v1328_v35 = vpop.f32.mrf.mxu3  ;;  %v335_v54 = vmul.f32 %v1326_v34, %v1326_v34  ;;  %v266_v57 = vsel %vm264_vm1, %v1326_v34, 0.0 }
  0x8a   :  { %v267_v63 = vadd.f32 %v266_v57, %v265_v59 }
  0x8b   :  { %v367_v60 = vsel %vm264_vm1, %v335_v54, 0.0 }
  0x8c   :  { %v368_v4 = vadd.f32 %v367_v60, %v366_v0 }
  0x90   :  { %v1330_v36 = vpop.f32.mrf.mxu0 }
  0x91   :  { %v1332_v37 = vpop.f32.mrf.mxu3  ;;  %v336_v58 = vmul.f32 %v1330_v36, %v1330_v36  ;;  %v268_v61 = vsel %vm264_vm1, %v1330_v36, 0.0 }
  0x92   :  { %v269_v5 = vadd.f32 %v268_v61, %v267_v63 }
  0x93   :  { %v369_v1 = vsel %vm264_vm1, %v336_v58, 0.0 }
  0x94   :  { %v370_v10 = vadd.f32 %v369_v1, %v368_v4 }
  0x98   :  { %v1334_v38 = vpop.f32.mrf.mxu0 }
  0x99   :  { %v1338_v40 = vpop.f32.mrf.mxu3  ;;  %v337_v62 = vmul.f32 %v1334_v38, %v1334_v38  ;;  %v270_v2 = vsel %vm264_vm1, %v1334_v38, 0.0 }
  0x9a   :  { %v271_v11 = vadd.f32 %v270_v2, %v269_v5 }
  0x9b   :  { %v371_v7 = vsel %vm264_vm1, %v337_v62, 0.0 }
  0x9c   :  { %v372_v16 = vadd.f32 %v371_v7, %v370_v10 }
  0xa0   :  { %v1336_v39 = vpop.f32.mrf.mxu0 }
  0xa1   :  { %v1342_v42 = vpop.f32.mrf.mxu3  ;;  %v338_v3 = vmul.f32 %v1336_v39, %v1336_v39  ;;  %v272_v8 = vsel %vm264_vm1, %v1336_v39, 0.0 }
  0xa2   :  { %v273_v17 = vadd.f32 %v272_v8, %v271_v11 }
  0xa3   :  { %v373_v13 = vsel %vm264_vm1, %v338_v3, 0.0 }
  0xa4   :  { %v374_v21 = vadd.f32 %v373_v13, %v372_v16 }
  0xa8   :  { %v1340_v41 = vpop.f32.mrf.mxu0 }
  0xa9   :  { %v1346_v44 = vpop.f32.mrf.mxu3  ;;  %v339_v9 = vmul.f32 %v1340_v41, %v1340_v41  ;;  %v274_v14 = vsel %vm264_vm1, %v1340_v41, 0.0 }
  0xaa   :  { %v275_v22 = vadd.f32 %v274_v14, %v273_v17 }
  0xab   :  { %v375_v18 = vsel %vm264_vm1, %v339_v9, 0.0 }
  0xac   :  { %v376_v26 = vadd.f32 %v375_v18, %v374_v21 }
  0xb0   :  { %v1344_v43 = vpop.f32.mrf.mxu0 }
  0xb1   :  { %v1350_v46 = vpop.f32.mrf.mxu3  ;;  %v340_v15 = vmul.f32 %v1344_v43, %v1344_v43  ;;  %v276_v19 = vsel %vm264_vm1, %v1344_v43, 0.0 }
  0xb2   :  { %v277_v27 = vadd.f32 %v276_v19, %v275_v22 }
  0xb3   :  { %v377_v23 = vsel %vm264_vm1, %v340_v15, 0.0 }
  0xb4   :  { %v378_v31 = vadd.f32 %v377_v23, %v376_v26 }
  0xb8   :  { %v1348_v45 = vpop.f32.mrf.mxu0 }
  0xb9   :  { %v1356_v49 = vpop.f32.mrf.mxu3  ;;  %v341_v20 = vmul.f32 %v1348_v45, %v1348_v45  ;;  %v278_v24 = vsel %vm264_vm1, %v1348_v45, 0.0 }
  0xba   :  { %v279_v33 = vadd.f32 %v278_v24, %v277_v27 }
  0xbb   :  { %v379_v28 = vsel %vm264_vm1, %v341_v20, 0.0 }
  0xbc   :  { %v380_v60 = vadd.f32 %v379_v28, %v378_v31 }
  0xc0   :  { %v1352_v47 = vpop.f32.mrf.mxu0 }
  0xc1   :  { %v1360_v51 = vpop.f32.mrf.mxu3  ;;  %v342_v25 = vmul.f32 %v1352_v47, %v1352_v47  ;;  %v280_v29 = vsel %vm264_vm1, %v1352_v47, 0.0 }
  0xc2   :  { %v281_v61 = vadd.f32 %v280_v29, %v279_v33 }
  0xc3   :  { %v381_v57 = vsel %vm264_vm1, %v342_v25, 0.0 }
  0xc4   :  { %v382_v1 = vadd.f32 %v381_v57, %v380_v60 }
  0xc8   :  { %v1354_v48 = vpop.f32.mrf.mxu0 }
  0xc9   :  { %v1364_v53 = vpop.f32.mrf.mxu3  ;;  %v343_v30 = vmul.f32 %v1354_v48, %v1354_v48  ;;  %v282_v58 = vsel %vm264_vm1, %v1354_v48, 0.0 }
  0xca   :  { %v283_v2 = vadd.f32 %v282_v58, %v281_v61 }
  0xcb   :  { %v383_v62 = vsel %vm264_vm1, %v343_v30, 0.0 }
  0xcc   :  { %v384_v7 = vadd.f32 %v383_v62, %v382_v1  ;;  %v352_v1 = vmul.f32 %v1332_v37, %v1332_v37 }
  0xd0   :  { %v1358_v50 = vpop.f32.mrf.mxu0 }
  0xd1   :  { %v1389_v6 = vpop.f32.mrf.mxu3  ;;  %v344_v59 = vmul.f32 %v1358_v50, %v1358_v50  ;;  %v284_v63 = vsel %vm264_vm1, %v1358_v50, 0.0 }
  0xd2   :  { %v285_v8 = vadd.f32 %v284_v63, %v283_v2 }
  0xd3   :  { %v385_v3 = vsel %vm264_vm1, %v344_v59, 0.0  ;;  %v351_v59 = vmul.f32 %v1328_v35, %v1328_v35 }
  0xd4   :  { %v386_v13 = vadd.f32 %v385_v3, %v384_v7 }
  0xd5   :  { %v399_v7 = vsel %vm264_vm1, %v351_v59, 0.0 }
  0xd8   :  { %v1362_v52 = vpop.f32.mrf.mxu0 }
  0xd9   :  { %v1420_v56 = vpop.f32.mrf.mxu3  ;;  %v345_v0 = vmul.f32 %v1362_v52, %v1362_v52  ;;  %v286_v4 = vsel %vm264_vm1, %v1362_v52, 0.0 }
  0xda   :  { %v287_v14 = vadd.f32 %v286_v4, %v285_v8  ;;  %v300_v8 = vsel %vm264_vm1, %v1332_v37, 0.0 }
  0xdb   :  { %v387_v9 = vsel %vm264_vm1, %v345_v0, 0.0  ;;  %v298_v0 = vsel %vm264_vm1, %v1328_v35, 0.0 }
  0xdc   :  { %v388_v19 = vadd.f32 %v387_v9, %v386_v13  ;;  %v353_v9 = vmul.f32 %v1338_v40, %v1338_v40  ;;  %v401_v13 = vsel %vm264_vm1, %v352_v1, 0.0 }
  0xe0   :  { %v1368_v55 = vpop.f32.mrf.mxu0 }
  0xe1   :  { %v346_v5 = vmul.f32 %v1368_v55, %v1368_v55  ;;  %v288_v10 = vsel %vm264_vm1, %v1368_v55, 0.0  ;;  %v1449_v21 = vpop.f32.mrf.mxu3 }
  0xe2   :  { %v289_v20 = vadd.f32 %v288_v10, %v287_v14  ;;  %v302_v14 = vsel %vm264_vm1, %v1338_v40, 0.0 }
  0xe3   :  { %v389_v16 = vsel %vm264_vm1, %v346_v5, 0.0 }
  0xe4   :  { %v390_v25 = vadd.f32 %v389_v16, %v388_v19  ;;  %v354_v16 = vmul.f32 %v1342_v42, %v1342_v42  ;;  %v403_v19 = vsel %vm264_vm1, %v353_v9, 0.0 }
  0xe8   :  { %v1396_v12 = vpop.f32.mrf.mxu0 }
  0xe9   :  { %v347_v11 = vmul.f32 %v1396_v12, %v1396_v12  ;;  %v290_v17 = vsel %vm264_vm1, %v1396_v12, 0.0  ;;  %v1473_v5 = vpop.f32.mrf.mxu3 }
  0xea   :  { %v291_v26 = vadd.f32 %v290_v17, %v289_v20  ;;  %v304_v20 = vsel %vm264_vm1, %v1342_v42, 0.0 }
  0xeb   :  { %v391_v22 = vsel %vm264_vm1, %v347_v11, 0.0 }
  0xec   :  { %v392_v29 = vadd.f32 %v391_v22, %v390_v25  ;;  %v355_v22 = vmul.f32 %v1346_v44, %v1346_v44  ;;  %v405_v25 = vsel %vm264_vm1, %v354_v16, 0.0 }
  0xf0   :  { %v1418_v54 = vpop.f32.mrf.mxu0 }
  0xf1   :  { %v348_v18 = vmul.f32 %v1418_v54, %v1418_v54  ;;  %v292_v23 = vsel %vm264_vm1, %v1418_v54, 0.0 }
  0xf2   :  { %v293_v30 = vadd.f32 %v292_v23, %v291_v26  ;;  %v306_v26 = vsel %vm264_vm1, %v1346_v44, 0.0 }
  0xf3   :  { %v393_v27 = vsel %vm264_vm1, %v348_v18, 0.0 }
  0xf4   :  { %v394_v33 = vadd.f32 %v393_v27, %v392_v29  ;;  %v356_v27 = vmul.f32 %v1350_v46, %v1350_v46 }
  0xf8   :  { %v1442_v15 = vpop.f32.mrf.mxu0 }
  0xf9   :  { %v349_v24 = vmul.f32 %v1442_v15, %v1442_v15  ;;  %v294_v28 = vsel %vm264_vm1, %v1442_v15, 0.0 }
  0xfa   :  { %v295_v57 = vadd.f32 %v294_v28, %v293_v30  ;;  %v407_v30 = vsel %vm264_vm1, %v355_v22, 0.0 }
  0xfb   :  { %v395_v31 = vsel %vm264_vm1, %v349_v24, 0.0 }
  0xfc   :  { %v396_v62 = vadd.f32 %v395_v31, %v394_v33  ;;  %v308_v31 = vsel %vm264_vm1, %v1350_v46, 0.0  ;;  %v357_v33 = vmul.f32 %v1356_v49, %v1356_v49 }
 0x100   :  { %v1460_v58 = vpop.f32.mrf.mxu0 }
 0x101   :  { %v296_v60 = vsel %vm264_vm1, %v1460_v58, 0.0  ;;  %v350_v61 = vmul.f32 %v1460_v58, %v1460_v58 }
 0x102   :  { %v297_v63 = vadd.f32 %v296_v60, %v295_v57  ;;  %v1500_v60 = vpop.f32.mrf.mxu3 }
 0x103   :  { %v397_v2 = vsel %vm264_vm1, %v350_v61, 0.0  ;;  %v409_v61 = vsel %vm264_vm1, %v356_v27, 0.0 }
 0x104   :  { %v299_v3 = vadd.f32 %v298_v0, %v297_v63  ;;  %v398_v4 = vadd.f32 %v397_v2, %v396_v62  ;;  %v310_v62 = vsel %vm264_vm1, %v1356_v49, 0.0  ;;  %v358_v63 = vmul.f32 %v1360_v51, %v1360_v51 }
 0x105   :  { %v411_v2 = vsel %vm264_vm1, %v357_v33, 0.0 }
 0x106   :  { %v301_v10 = vadd.f32 %v300_v8, %v299_v3  ;;  %v400_v11 = vadd.f32 %v399_v7, %v398_v4  ;;  %v312_v3 = vsel %vm264_vm1, %v1360_v51, 0.0  ;;  %v359_v4 = vmul.f32 %v1364_v53, %v1364_v53 }
 0x107   :  { %v413_v9 = vsel %vm264_vm1, %v358_v63, 0.0 }
 0x108   :  { %v303_v17 = vadd.f32 %v302_v14, %v301_v10  ;;  %v402_v18 = vadd.f32 %v401_v13, %v400_v11  ;;  %v314_v10 = vsel %vm264_vm1, %v1364_v53, 0.0  ;;  %v360_v11 = vmul.f32 %v1389_v6, %v1389_v6 }
 0x109   :  { %v415_v16 = vsel %vm264_vm1, %v359_v4, 0.0 }
 0x10a   :  { %v305_v23 = vadd.f32 %v304_v20, %v303_v17  ;;  %v404_v24 = vadd.f32 %v403_v19, %v402_v18  ;;  %v316_v17 = vsel %vm264_vm1, %v1389_v6, 0.0  ;;  %v361_v18 = vmul.f32 %v1420_v56, %v1420_v56  ;;  %v1527_v27 = vpop.f32.mrf.mxu3 }
 0x10b   :  { %v417_v22 = vsel %vm264_vm1, %v360_v11, 0.0 }
 0x10c   :  { %v307_v28 = vadd.f32 %v306_v26, %v305_v23  ;;  %v406_v29 = vadd.f32 %v405_v25, %v404_v24  ;;  %v318_v23 = vsel %vm264_vm1, %v1420_v56, 0.0  ;;  %v362_v24 = vmul.f32 %v1449_v21, %v1449_v21 }
 0x10e   :  { %v309_v57 = vadd.f32 %v308_v31, %v307_v28  ;;  %v408_v59 = vadd.f32 %v407_v30, %v406_v29  ;;  %v419_v28 = vsel %vm264_vm1, %v361_v18, 0.0  ;;  %v320_v29 = vsel %vm264_vm1, %v1449_v21, 0.0 }
 0x10f   :  { %v363_v30 = vmul.f32 %v1473_v5, %v1473_v5 }
 0x110   :  { %v410_v0 = vadd.f32 %v409_v61, %v408_v59  ;;  %v311_v1 = vadd.f32 %v310_v62, %v309_v57  ;;  %v421_v57 = vsel %vm264_vm1, %v362_v24, 0.0  ;;  %v322_v59 = vsel %vm264_vm1, %v1473_v5, 0.0 }
 0x111   :  { %v364_v61 = vmul.f32 %v1500_v60, %v1500_v60  ;;  %v365_v62 = vmul.f32 %v1527_v27, %v1527_v27 }
 0x112   :  { %v313_v7 = vadd.f32 %v312_v3, %v311_v1  ;;  %v412_v8 = vadd.f32 %v411_v2, %v410_v0  ;;  %v423_v1 = vsel %vm264_vm1, %v363_v30, 0.0  ;;  %v324_v2 = vsel %vm264_vm1, %v1500_v60, 0.0  ;;  %v561_v30 = vld [vmem:[%s2021_s3 + $0x38] sm:$0xff] }
 0x113   :  { %v326_v3 = vsel %vm264_vm1, %v1527_v27, 0.0  ;;  %666 = vmatpush.msra.mxu1 %v561_v30  ;;  %1111 = vmatpush.msra.mxu2 %v561_v30 }
 0x114   :  { %v315_v13 = vadd.f32 %v314_v10, %v313_v7  ;;  %v414_v14 = vadd.f32 %v413_v9, %v412_v8  ;;  %v425_v8 = vsel %vm264_vm1, %v364_v61, 0.0  ;;  %v427_v9 = vsel %vm264_vm1, %v365_v62, 0.0  ;;  %1112 = vmatpush.msrb.mxu3 %v561_v30  ;;  %v559_v61 = vld [vmem:[%s2021_s3 + $0x28] sm:$0xff] }
 0x116   :  { %v317_v19 = vadd.f32 %v316_v17, %v315_v13  ;;  %v416_v20 = vadd.f32 %v415_v16, %v414_v14 }
 0x118   :  { %v319_v25 = vadd.f32 %v318_v23, %v317_v19  ;;  %v418_v26 = vadd.f32 %v417_v22, %v416_v20 }
 0x11a   :  { %v321_v31 = vadd.f32 %v320_v29, %v319_v25  ;;  %v420_v33 = vadd.f32 %v419_v28, %v418_v26 }
 0x11c   :  { %v422_v63 = vadd.f32 %v421_v57, %v420_v33  ;;  %v323_v0 = vadd.f32 %v322_v59, %v321_v31  ;;  %v560_v57 = vld [vmem:[%s2021_s3 + $0x30] sm:$0xff] }
 0x11d   :  { %667 = vmatpush.msra.mxu1 %v560_v57  ;;  %1113 = vmatpush.msra.mxu2 %v560_v57 }
 0x11e   :  { %v424_v4 = vadd.f32 %v423_v1, %v422_v63  ;;  %v325_v7 = vadd.f32 %v324_v2, %v323_v0  ;;  %1114 = vmatpush.msrb.mxu3 %v560_v57  ;;  %v558_v63 = vld [vmem:[%s2021_s3 + $0x20] sm:$0xff]  ;;  %v557_v1 = vld [vmem:[%s2021_s3 + $0x18] sm:$0xff]  ;;  %v556_v2 = vld [vmem:[%s2021_s3 + $0x10] sm:$0xff] }
 0x11f   :  { %668 = vmatpush.msra.mxu1 %v559_v61  ;;  %1115 = vmatpush.msra.mxu2 %v559_v61 }
 0x120   :  { %v426_v10 = vadd.f32 %v425_v8, %v424_v4  ;;  %v327_v11 = vadd.f32 %v326_v3, %v325_v7  ;;  %1116 = vmatpush.msrb.mxu3 %v559_v61  ;;  %v555_v3 = vld [vmem:[%s2021_s3 + $0x8] sm:$0xff]  ;;  %v554_v4 = vld [vmem:[%s2021_s3] sm:$0xff] }
 0x121   :  { %669 = vmatpush.msra.mxu1 %v558_v63  ;;  %1117 = vmatpush.msra.mxu2 %v558_v63 }
 0x122   :  { %v328_v13 = vrot.slane %v327_v11, 4  ;;  %v428_v14 = vadd.f32 %v427_v9, %v426_v10  ;;  %1118 = vmatpush.msrb.mxu3 %v558_v63 }
 0x123   :  { %670 = vmatpush.msra.mxu1 %v557_v1  ;;  %1119 = vmatpush.msra.mxu2 %v557_v1 }
 0x124   :  { %v329_v16 = vadd.f32 %v328_v13, %v327_v11  ;;  %v429_v17 = vrot.slane %v428_v14, 4  ;;  %1120 = vmatpush.msrb.mxu3 %v557_v1  ;;  %v440_v13 = vld [vmem:[%s2020_s2] sm:$0x1] }
 0x125   :  { %671 = vmatpush.msra.mxu1 %v556_v2  ;;  %1121 = vmatpush.msra.mxu2 %v556_v2 }
 0x126   :  { %v330_v18 = vrot.slane %v329_v16, 2  ;;  %v430_v19 = vadd.f32 %v429_v17, %v428_v14  ;;  %1122 = vmatpush.msrb.mxu3 %v556_v2 }
 0x127   :  { %672 = vmatpush.msra.mxu1 %v555_v3  ;;  %1123 = vmatpush.msra.mxu2 %v555_v3 }
 0x128   :  { %v331_v20 = vadd.f32 %v330_v18, %v329_v16  ;;  %v431_v22 = vrot.slane %v430_v19, 2  ;;  %1124 = vmatpush.msrb.mxu3 %v555_v3  ;;  %v441_v18 = vld [vmem:[%s2020_s2 + $0x1] sm:$0x1] }
 0x129   :  { %673 = vmatpush.msra.mxu1 %v554_v4  ;;  %1125 = vmatpush.msra.mxu2 %v554_v4 }
 0x12a   :  { %v332_v23 = vrot.slane %v331_v20, 1  ;;  %v432_v24 = vadd.f32 %v431_v22, %v430_v19  ;;  %1126 = vmatpush.msrb.mxu3 %v554_v4 }
 0x12c   :  { %v333_v25 = vadd.f32 %v332_v23, %v331_v20  ;;  %v433_v26 = vrot.slane %v432_v24, 1 }
 0x12e   :  { %v434_v28 = vadd.f32 %v433_v26, %v432_v24  ;;  %v435_v29 = vmul.f32 0.00390625, %v333_v25 }
 0x130   :  { %v436_v31 = vmul.f32 0.00390625, %v434_v28  ;;  %v437_v33 = vmul.f32 %v435_v29, %v435_v29 }
 0x132   :  { %v438_v59 = vsub.f32 %v436_v31, %v437_v33 }
 0x134   :  { %v439_v62 = vmax.f32 %v438_v59, 0.0 }
 0x136   :  { %v442_v0 = vadd.f32 1e-05, %v439_v62 }
 0x138   :  { %1130 = vrsqrt.f32 %v442_v0  ;;  %vm449_vm3 = vweird.f32 %v442_v0 }
 0x13e   :  { %v1131_v7 = vpop.eup %1130 }
 0x13f   :  { %v444_v8 = vmul.f32 %v1131_v7, %v442_v0  ;;  %vm450_vm2 = vweird.f32 %v1131_v7 }
 0x140   :  { %vm451_vm4 = vmor %vm449_vm3, %vm450_vm2 }
 0x141   :  { %v445_v9 = vmul.f32 %v1131_v7, %v444_v8 }
 0x143   :  { %v446_v10 = vmul.f32 0.5, %v445_v9 }
 0x145   :  { %v447_v11 = vsub.f32 1.5, %v446_v10 }
 0x147   :  { %v448_v14 = vmul.f32 %v1131_v7, %v447_v11 }
 0x149   :  { %v452_v16 = vsel %vm451_vm4, %v1131_v7, %v448_v14 }
 0x14a   :  { %v453_v17 = vmul.f32 %v452_v16, %v440_v13 }
 0x14c   :  { %v1578_v19 = vperm.slane %v453_v17, 0  ;;  %v487_v20 = vmul.f32 %v453_v17, %v435_v29 }
 0x14e   :  { %v488_v22 = vsub.f32 %v441_v18, %v487_v20  ;;  %v486_v23 = vmul.f32 %v1578_v19, %v1527_v27  ;;  %v455_v28 = vmul.f32 %v1578_v19, %v1320_v32  ;;  %v470_v30 = vmul.f32 %v1578_v19, %v1442_v15 }
 0x14f   :  { %v456_v27 = vmul.f32 %v1578_v19, %v1326_v34  ;;  %v457_v59 = vmul.f32 %v1578_v19, %v1330_v36  ;;  %v471_v32 = vmul.f32 %v1578_v19, %v1460_v58  ;;  %v463_v15 = vmul.f32 %v1578_v19, %v1352_v47 }
 0x150   :  { %v1582_v24 = vperm.slane %v488_v22, 0  ;;  %v464_v61 = vmul.f32 %v1578_v19, %v1354_v48  ;;  %v465_v62 = vmul.f32 %v1578_v19, %v1358_v50  ;;  %v466_v34 = vmul.f32 %v1578_v19, %v1362_v52 }
 0x151   :  { %v467_v36 = vmul.f32 %v1578_v19, %v1368_v55  ;;  %v478_v58 = vmul.f32 %v1578_v19, %v1356_v49  ;;  %v468_v47 = vmul.f32 %v1578_v19, %v1396_v12  ;;  %v469_v48 = vmul.f32 %v1578_v19, %v1418_v54 }
 0x152   :  { %v521_v25 = vadd.f32 %v1582_v24, %v486_v23  ;;  %v490_v31 = vadd.f32 %v1582_v24, %v455_v28  ;;  %v505_v29 = vadd.f32 %v1582_v24, %v470_v30  ;;  %v506_v63 = vadd.f32 %v1582_v24, %v471_v32 }
 0x153   :  { %v491_v0 = vadd.f32 %v1582_v24, %v456_v27  ;;  %v479_v50 = vmul.f32 %v1578_v19, %v1360_v51  ;;  %v480_v52 = vmul.f32 %v1578_v19, %v1364_v53  ;;  %v481_v55 = vmul.f32 %v1578_v19, %v1389_v6 }
 0x154   :  { %v553_v26 = vmax.f32 %v521_v25, 0.0  ;;  %v522_v33 = vmax.f32 %v490_v31, 0.0  ;;  %v537_v57 = vmax.f32 %v505_v29, 0.0  ;;  %v1625_v49 = vadd.f32 %v1582_v24, %v463_v15 }
 0x155   :  { %v1628_v1 = vadd.f32 %v1582_v24, %v478_v58  ;;  %v1631_v12 = vadd.f32 %v1582_v24, %v464_v61  ;;  %v1634_v54 = vadd.f32 %v1582_v24, %v479_v50  ;;  %v1637_v51 = vadd.f32 %v1582_v24, %v465_v62 }
 0x156   :  { %1109 = vmatmul.msk.f32.vlgmr.msrb.gmra.mxu3 %vm264_vm1, %v553_v26  ;;  %1078 = vmatmul.msk.f32.vlgmr.msra.gmra.mxu1 %vm264_vm1, %v522_v33  ;;  %v1640_v53 = vadd.f32 %v1582_v24, %v480_v52  ;;  %v1643_v6 = vadd.f32 %v1582_v24, %v466_v34  ;;  %v482_v2 = vmul.f32 %v1578_v19, %v1420_v56  ;;  %v523_v3 = vmax.f32 %v491_v0, 0.0 }
 0x157   :  { %1093 = vmatmul.msk.f32.vlgmr.msra.gmra.mxu2 %vm264_vm1, %v537_v57  ;;  %v538_v4 = vmax.f32 %v506_v63, 0.0  ;;  %v1648_v7 = vadd.f32 %v1582_v24, %v481_v55  ;;  %v472_v8 = vmul.f32 %v1578_v19, %v1328_v35  ;;  %v483_v9 = vmul.f32 %v1578_v19, %v1449_v21 }
 0x158   :  { %v484_v10 = vmul.f32 %v1578_v19, %v1473_v5  ;;  %v485_v11 = vmul.f32 %v1578_v19, %v1500_v60  ;;  %v1661_v56 = vadd.f32 %v1582_v24, %v467_v36  ;;  %v1664_v13 = vadd.f32 %v1582_v24, %v482_v2 }
 0x159   :  { %v1667_v35 = vadd.f32 %v1582_v24, %v468_v47  ;;  %v1670_v21 = vadd.f32 %v1582_v24, %v483_v9  ;;  %v1673_v5 = vadd.f32 %v1582_v24, %v469_v48  ;;  %v492_v16 = vadd.f32 %v1582_v24, %v457_v59 }
 0x15a   :  { %v1676_v60 = vadd.f32 %v1582_v24, %v484_v10  ;;  %v1679_v14 = vadd.f32 %v1582_v24, %v485_v11  ;;  %v507_v17 = vadd.f32 %v1582_v24, %v472_v8  ;;  %v458_v22 = vmul.f32 %v1578_v19, %v1334_v38 }
 0x15b   :  { %v524_v18 = vmax.f32 %v492_v16, 0.0  ;;  %v473_v23 = vmul.f32 %v1578_v19, %v1332_v37  ;;  %v459_v31 = vmul.f32 %v1578_v19, %v1336_v39  ;;  %v474_v29 = vmul.f32 %v1578_v19, %v1338_v40 }
 0x15c   :  { %v539_v20 = vmax.f32 %v507_v17, 0.0  ;;  %v493_v25 = vadd.f32 %v1582_v24, %v458_v22  ;;  %v460_v27 = vmul.f32 %v1578_v19, %v1340_v41  ;;  %v475_v59 = vmul.f32 %v1578_v19, %v1342_v42 }
 0x15d   :  { %v508_v26 = vadd.f32 %v1582_v24, %v473_v23  ;;  %v494_v37 = vadd.f32 %v1582_v24, %v459_v31  ;;  %v509_v38 = vadd.f32 %v1582_v24, %v474_v29  ;;  %v461_v61 = vmul.f32 %v1578_v19, %v1344_v43 }
 0x15e   :  { %1079 = vmatmul.msk.f32.gmra.mxu1 %vm264_vm1, %v523_v3  ;;  %v525_v28 = vmax.f32 %v493_v25, 0.0  ;;  %v495_v39 = vadd.f32 %v1582_v24, %v460_v27  ;;  %v510_v40 = vadd.f32 %v1582_v24, %v475_v59  ;;  %v476_v62 = vmul.f32 %v1578_v19, %v1346_v44 }
 0x15f   :  { %1094 = vmatmul.msk.f32.gmra.mxu2 %vm264_vm1, %v538_v4  ;;  %v540_v30 = vmax.f32 %v508_v26, 0.0  ;;  %v526_v33 = vmax.f32 %v494_v37, 0.0  ;;  %v541_v57 = vmax.f32 %v509_v38, 0.0  ;;  %v496_v41 = vadd.f32 %v1582_v24, %v461_v61 }
 0x160   :  { %v527_v32 = vmax.f32 %v495_v39, 0.0  ;;  %v542_v15 = vmax.f32 %v510_v40, 0.0  ;;  %v511_v42 = vadd.f32 %v1582_v24, %v476_v62  ;;  %v462_v58 = vmul.f32 %v1578_v19, %v1348_v45 }
 0x161   :  { %v528_v34 = vmax.f32 %v496_v41, 0.0  ;;  %v477_v63 = vmul.f32 %v1578_v19, %v1350_v46  ;;  %v530_v48 = vmax.f32 %v1625_v49, 0.0  ;;  %v545_v45 = vmax.f32 %v1628_v1, 0.0 }
 0x162   :  { %v543_v36 = vmax.f32 %v511_v42, 0.0  ;;  %v497_v43 = vadd.f32 %v1582_v24, %v462_v58  ;;  %v531_v46 = vmax.f32 %v1631_v12, 0.0  ;;  %v546_v19 = vmax.f32 %v1634_v54, 0.0 }
 0x163   :  { %v512_v44 = vadd.f32 %v1582_v24, %v477_v63  ;;  %v532_v24 = vmax.f32 %v1637_v51, 0.0  ;;  %v547_v50 = vmax.f32 %v1640_v53, 0.0  ;;  %v533_v52 = vmax.f32 %v1643_v6, 0.0 }
 0x164   :  { %v529_v0 = vmax.f32 %v497_v43, 0.0  ;;  %v548_v55 = vmax.f32 %v1648_v7, 0.0  ;;  %v534_v49 = vmax.f32 %v1661_v56, 0.0  ;;  %v549_v1 = vmax.f32 %v1664_v13, 0.0 }
 0x165   :  { %v544_v47 = vmax.f32 %v512_v44, 0.0  ;;  %v535_v12 = vmax.f32 %v1667_v35, 0.0  ;;  %v550_v54 = vmax.f32 %v1670_v21, 0.0  ;;  %v536_v51 = vmax.f32 %v1673_v5, 0.0 }
 0x166   :  { %1080 = vmatmul.msk.f32.gmra.mxu1 %vm264_vm1, %v524_v18  ;;  %v551_v53 = vmax.f32 %v1676_v60, 0.0  ;;  %v552_v6 = vmax.f32 %v1679_v14, 0.0 }
 0x167   :  { %1095 = vmatmul.msk.f32.gmra.mxu2 %vm264_vm1, %v539_v20 }
 0x16e   :  { %1081 = vmatmul.msk.f32.gmra.mxu1 %vm264_vm1, %v525_v28 }
 0x16f   :  { %1096 = vmatmul.msk.f32.gmra.mxu2 %vm264_vm1, %v540_v30 }
 0x176   :  { %1082 = vmatmul.msk.f32.gmra.mxu1 %vm264_vm1, %v526_v33 }
 0x177   :  { %1097 = vmatmul.msk.f32.gmra.mxu2 %vm264_vm1, %v541_v57 }
 0x17e   :  { %1083 = vmatmul.msk.f32.gmra.mxu1 %vm264_vm1, %v527_v32 }
 0x17f   :  { %1098 = vmatmul.msk.f32.gmra.mxu2 %vm264_vm1, %v542_v15 }
 0x186   :  { %1084 = vmatmul.msk.f32.gmra.mxu1 %vm264_vm1, %v528_v34 }
 0x187   :  { %1099 = vmatmul.msk.f32.gmra.mxu2 %vm264_vm1, %v543_v36 }
 0x18e   :  { %1085 = vmatmul.msk.f32.gmra.mxu1 %vm264_vm1, %v529_v0 }
 0x18f   :  { %1100 = vmatmul.msk.f32.gmra.mxu2 %vm264_vm1, %v544_v47 }
 0x196   :  { %1086 = vmatmul.msk.f32.gmra.mxu1 %vm264_vm1, %v530_v48 }
 0x197   :  { %1101 = vmatmul.msk.f32.gmra.mxu2 %vm264_vm1, %v545_v45 }
 0x19e   :  { %1087 = vmatmul.msk.f32.gmra.mxu1 %vm264_vm1, %v531_v46 }
 0x19f   :  { %1102 = vmatmul.msk.f32.gmra.mxu2 %vm264_vm1, %v546_v19 }
 0x1a6   :  { %1088 = vmatmul.msk.f32.gmra.mxu1 %vm264_vm1, %v532_v24 }
 0x1a7   :  { %1103 = vmatmul.msk.f32.gmra.mxu2 %vm264_vm1, %v547_v50 }
 0x1ae   :  { %1089 = vmatmul.msk.f32.gmra.mxu1 %vm264_vm1, %v533_v52 }
 0x1af   :  { %1104 = vmatmul.msk.f32.gmra.mxu2 %vm264_vm1, %v548_v55 }
 0x1b6   :  { %1090 = vmatmul.msk.f32.gmra.mxu1 %vm264_vm1, %v534_v49 }
 0x1b7   :  { %1105 = vmatmul.msk.f32.gmra.mxu2 %vm264_vm1, %v549_v1 }
 0x1be   :  { %1091 = vmatmul.msk.f32.gmra.mxu1 %vm264_vm1, %v535_v12 }
 0x1bf   :  { %1106 = vmatmul.msk.f32.gmra.mxu2 %vm264_vm1, %v550_v54 }
 0x1c6   :  { %1092 = vmatmul.msk.f32.gmra.mxu1 %vm264_vm1, %v536_v51 }
 0x1c7   :  { %1107 = vmatmul.msk.f32.gmra.mxu2 %vm264_vm1, %v551_v53 }
 0x1cf   :  { %1108 = vmatmul.msk.f32.gmra.mxu2 %vm264_vm1, %v552_v6 }
 0x1d3   :  { %v1755_v2 = vpop.f32.mrf.mxu1 }
 0x1d4   :  { %v808_v26 = vmul.f32 %v1755_v2, %v1755_v2 }
 0x1da   :  { %v1757_v3 = vpop.f32.mrf.mxu2 }
 0x1db   :  { %v1759_v4 = vpop.f32.mrf.mxu1 }
 0x1dc   :  { %v809_v25 = vmul.f32 %v1759_v4, %v1759_v4  ;;  %v771_v28 = vadd.f32 %v1759_v4, %v1755_v2 }
 0x1de   :  { %v840_v29 = vadd.f32 %v809_v25, %v808_v26 }
 0x1e2   :  { %v1761_v7 = vpop.f32.mrf.mxu2 }
 0x1e3   :  { %v1763_v8 = vpop.f32.mrf.mxu1 }
 0x1e4   :  { %v810_v30 = vmul.f32 %v1763_v8, %v1763_v8  ;;  %v772_v37 = vadd.f32 %v771_v28, %v1763_v8 }
 0x1e6   :  { %v841_v33 = vadd.f32 %v840_v29, %v810_v30 }
 0x1ea   :  { %v1765_v9 = vpop.f32.mrf.mxu2 }
 0x1eb   :  { %v1767_v10 = vpop.f32.mrf.mxu1 }
 0x1ec   :  { %v811_v38 = vmul.f32 %v1767_v10, %v1767_v10  ;;  %v773_v57 = vadd.f32 %v772_v37, %v1767_v10 }
 0x1ee   :  { %v842_v39 = vadd.f32 %v841_v33, %v811_v38  ;;  %v823_v38 = vmul.f32 %v1757_v3, %v1757_v3 }
 0x1f2   :  { %v1769_v11 = vpop.f32.mrf.mxu2 }
 0x1f3   :  { %v1771_v56 = vpop.f32.mrf.mxu1 }
 0x1f4   :  { %v812_v27 = vmul.f32 %v1771_v56, %v1771_v56  ;;  %v774_v40 = vadd.f32 %v773_v57, %v1771_v56 }
 0x1f6   :  { %v843_v15 = vadd.f32 %v842_v39, %v812_v27  ;;  %v824_v27 = vmul.f32 %v1761_v7, %v1761_v7 }
 0x1fa   :  { %v1773_v13 = vpop.f32.mrf.mxu2 }
 0x1fb   :  { %v1775_v35 = vpop.f32.mrf.mxu1 }
 0x1fc   :  { %v813_v32 = vmul.f32 %v1775_v35, %v1775_v35  ;;  %v775_v61 = vadd.f32 %v774_v40, %v1775_v35 }
 0x1fe   :  { %v844_v42 = vadd.f32 %v843_v15, %v813_v32  ;;  %v825_v32 = vmul.f32 %v1765_v9, %v1765_v9 }
 0x202   :  { %v1777_v21 = vpop.f32.mrf.mxu2 }
 0x203   :  { %v1779_v5 = vpop.f32.mrf.mxu1 }
 0x204   :  { %v814_v62 = vmul.f32 %v1779_v5, %v1779_v5  ;;  %v776_v34 = vadd.f32 %v775_v61, %v1779_v5 }
 0x206   :  { %v845_v58 = vadd.f32 %v844_v42, %v814_v62  ;;  %v826_v62 = vmul.f32 %v1769_v11, %v1769_v11 }
 0x20a   :  { %v1781_v60 = vpop.f32.mrf.mxu2 }
 0x20b   :  { %v1783_v14 = vpop.f32.mrf.mxu1 }
 0x20c   :  { %v815_v36 = vmul.f32 %v1783_v14, %v1783_v14  ;;  %v777_v63 = vadd.f32 %v776_v34, %v1783_v14 }
 0x20e   :  { %v846_v44 = vadd.f32 %v845_v58, %v815_v36  ;;  %v827_v58 = vmul.f32 %v1773_v13, %v1773_v13 }
 0x212   :  { %v1785_v16 = vpop.f32.mrf.mxu2 }
 0x213   :  { %v1787_v17 = vpop.f32.mrf.mxu1 }
 0x214   :  { %v816_v43 = vmul.f32 %v1787_v17, %v1787_v17  ;;  %v778_v0 = vadd.f32 %v777_v63, %v1787_v17 }
 0x216   :  { %v847_v45 = vadd.f32 %v846_v44, %v816_v43  ;;  %v828_v44 = vmul.f32 %v1777_v21, %v1777_v21 }
 0x21a   :  { %v1789_v18 = vpop.f32.mrf.mxu2 }
 0x21b   :  { %v1791_v20 = vpop.f32.mrf.mxu1 }
 0x21c   :  { %v817_v47 = vmul.f32 %v1791_v20, %v1791_v20  ;;  %v779_v46 = vadd.f32 %v778_v0, %v1791_v20 }
 0x21e   :  { %v848_v50 = vadd.f32 %v847_v45, %v817_v47  ;;  %v829_v45 = vmul.f32 %v1781_v60, %v1781_v60 }
 0x222   :  { %v1795_v23 = vpop.f32.mrf.mxu2 }
 0x223   :  { %v1793_v22 = vpop.f32.mrf.mxu1 }
 0x224   :  { %v818_v19 = vmul.f32 %v1793_v22, %v1793_v22  ;;  %v780_v52 = vadd.f32 %v779_v46, %v1793_v22 }
 0x226   :  { %v849_v49 = vadd.f32 %v848_v50, %v818_v19  ;;  %v830_v50 = vmul.f32 %v1785_v16, %v1785_v16 }
 0x22a   :  { %v1813_v59 = vpop.f32.mrf.mxu2 }
 0x22b   :  { %v1805_v31 = vpop.f32.mrf.mxu1 }
 0x22c   :  { %v819_v55 = vmul.f32 %v1805_v31, %v1805_v31  ;;  %v781_v1 = vadd.f32 %v780_v52, %v1805_v31 }
 0x22e   :  { %v850_v54 = vadd.f32 %v849_v49, %v819_v55  ;;  %v831_v49 = vmul.f32 %v1789_v18, %v1789_v18 }
 0x232   :  { %v1832_v48 = vpop.f32.mrf.mxu2 }
 0x233   :  { %v1821_v41 = vpop.f32.mrf.mxu1 }
 0x234   :  { %v820_v12 = vmul.f32 %v1821_v41, %v1821_v41  ;;  %v782_v51 = vadd.f32 %v781_v1, %v1821_v41 }
 0x236   :  { %v851_v6 = vadd.f32 %v850_v54, %v820_v12 }
 0x23a   :  { %v1849_v26 = vpop.f32.mrf.mxu2 }
 0x23b   :  { %v1837_v24 = vpop.f32.mrf.mxu1 }
 0x23c   :  { %v821_v53 = vmul.f32 %v1837_v24, %v1837_v24  ;;  %v783_v25 = vadd.f32 %v782_v51, %v1837_v24  ;;  %v832_v51 = vmul.f32 %v1795_v23, %v1795_v23 }
 0x23e   :  { %v852_v30 = vadd.f32 %v851_v6, %v821_v53 }
 0x242   :  { %v1868_v36 = vpop.f32.mrf.mxu2 }
 0x243   :  { %v1851_v28 = vpop.f32.mrf.mxu1 }
 0x244   :  { %v784_v29 = vadd.f32 %v783_v25, %v1851_v28  ;;  %v822_v37 = vmul.f32 %v1851_v28, %v1851_v28  ;;  %v833_v25 = vmul.f32 %v1813_v59, %v1813_v59 }
 0x246   :  { %v785_v33 = vadd.f32 %v784_v29, %v1757_v3  ;;  %v853_v57 = vadd.f32 %v852_v30, %v822_v37  ;;  %v834_v37 = vmul.f32 %v1832_v48, %v1832_v48 }
 0x248   :  { %v786_v39 = vadd.f32 %v785_v33, %v1761_v7  ;;  %v854_v40 = vadd.f32 %v853_v57, %v823_v38  ;;  %v835_v57 = vmul.f32 %v1849_v26, %v1849_v26 }
 0x24a   :  { %v787_v15 = vadd.f32 %v786_v39, %v1765_v9  ;;  %v855_v61 = vadd.f32 %v854_v40, %v824_v27  ;;  %v1885_v54 = vpop.f32.mrf.mxu2  ;;  %v836_v40 = vmul.f32 %v1868_v36, %v1868_v36 }
 0x24c   :  { %v788_v42 = vadd.f32 %v787_v15, %v1769_v11  ;;  %v856_v34 = vadd.f32 %v855_v61, %v825_v32 }
 0x24e   :  { %v789_v63 = vadd.f32 %v788_v42, %v1773_v13  ;;  %v857_v43 = vadd.f32 %v856_v34, %v826_v62  ;;  %v837_v42 = vmul.f32 %v1885_v54, %v1885_v54 }
 0x250   :  { %v790_v0 = vadd.f32 %v789_v63, %v1777_v21  ;;  %v858_v47 = vadd.f32 %v857_v43, %v827_v58  ;;  %v1905_v58 = vpop.f32.mrf.mxu3 }
 0x252   :  { %v791_v46 = vadd.f32 %v790_v0, %v1781_v60  ;;  %v859_v19 = vadd.f32 %v858_v47, %v828_v44  ;;  %v765_v61 = vpop.f32.mrf.mxu2  ;;  %v839_v0 = vmul.f32 %v1905_v58, %v1905_v58 }
 0x253   :  { %v838_v44 = vmul.f32 %v765_v61, %v765_v61 }
 0x254   :  { %v860_v52 = vadd.f32 %v859_v19, %v829_v45  ;;  %v792_v55 = vadd.f32 %v791_v46, %v1785_v16 }
 0x256   :  { %v793_v1 = vadd.f32 %v792_v55, %v1789_v18  ;;  %v861_v12 = vadd.f32 %v860_v52, %v830_v50 }
 0x258   :  { %v794_v53 = vadd.f32 %v793_v1, %v1795_v23  ;;  %v862_v6 = vadd.f32 %v861_v12, %v831_v49 }
 0x25a   :  { %v795_v30 = vadd.f32 %v794_v53, %v1813_v59  ;;  %v863_v29 = vadd.f32 %v862_v6, %v832_v51 }
 0x25c   :  { %v796_v38 = vadd.f32 %v795_v30, %v1832_v48  ;;  %v864_v33 = vadd.f32 %v863_v29, %v833_v25 }
 0x25e   :  { %v797_v27 = vadd.f32 %v796_v38, %v1849_v26  ;;  %v865_v39 = vadd.f32 %v864_v33, %v834_v37 }
 0x260   :  { %v798_v32 = vadd.f32 %v797_v27, %v1868_v36  ;;  %v866_v15 = vadd.f32 %v865_v39, %v835_v57 }
 0x262   :  { %v799_v62 = vadd.f32 %v798_v32, %v1885_v54  ;;  %v867_v34 = vadd.f32 %v866_v15, %v836_v40 }
 0x264   :  { %v868_v63 = vadd.f32 %v867_v34, %v837_v42  ;;  %v800_v43 = vadd.f32 %v799_v62, %v765_v61  ;;  %v882_v42 = vld [vmem:[%s2022_s4] sm:$0x1] }
 0x266   :  { %v801_v47 = vadd.f32 %v800_v43, %v1905_v58  ;;  %v869_v45 = vadd.f32 %v868_v63, %v838_v44  ;;  %v883_v44 = vld [vmem:[%s2022_s4 + $0x1] sm:$0x1]  ;;  %s1160_s4 = smov [#allocation2]  }
 0x267   :  { %s1032_s26 = sshll.u32 %s1160_s4, 4  ;;  %s1033_s26 = int_to_ptr.vmem [resolvable:$true] %s1032_s26 }
 0x268   :  { %v802_v46 = vrot.slane %v801_v47, 4  ;;  %v870_v19 = vadd.f32 %v869_v45, %v839_v0 }
 0x26a   :  { %v803_v50 = vadd.f32 %v802_v46, %v801_v47  ;;  %v871_v52 = vrot.slane %v870_v19, 4 }
 0x26c   :  { %v804_v55 = vrot.slane %v803_v50, 2  ;;  %v872_v49 = vadd.f32 %v871_v52, %v870_v19 }
 0x26e   :  { %v805_v1 = vadd.f32 %v804_v55, %v803_v50  ;;  %v873_v12 = vrot.slane %v872_v49, 2 }
 0x270   :  { %v806_v51 = vrot.slane %v805_v1, 1  ;;  %v874_v53 = vadd.f32 %v873_v12, %v872_v49 }
 0x272   :  { %v807_v6 = vadd.f32 %v806_v51, %v805_v1  ;;  %v875_v25 = vrot.slane %v874_v53, 1 }
 0x274   :  { %v876_v30 = vadd.f32 %v875_v25, %v874_v53  ;;  %v877_v29 = vmul.f32 0.00390625, %v807_v6 }
 0x276   :  { %v878_v37 = vmul.f32 0.00390625, %v876_v30  ;;  %v879_v38 = vmul.f32 %v877_v29, %v877_v29 }
 0x278   :  { %v880_v33 = vsub.f32 %v878_v37, %v879_v38 }
 0x27a   :  { %v881_v57 = vmax.f32 %v880_v33, 0.0 }
 0x27c   :  { %v884_v27 = vadd.f32 1e-05, %v881_v57 }
 0x27e   :  { %1132 = vrsqrt.f32 %v884_v27  ;;  %vm891_vm6 = vweird.f32 %v884_v27 }
 0x284   :  { %v1133_v39 = vpop.eup %1132 }
 0x285   :  { %v886_v40 = vmul.f32 %v1133_v39, %v884_v27  ;;  %vm892_vm5 = vweird.f32 %v1133_v39 }
 0x286   :  { %vm893_vm7 = vmor %vm891_vm6, %vm892_vm5 }
 0x287   :  { %v887_v32 = vmul.f32 %v1133_v39, %v886_v40 }
 0x289   :  { %v888_v15 = vmul.f32 0.5, %v887_v32 }
 0x28b   :  { %v889_v62 = vsub.f32 1.5, %v888_v15 }
 0x28d   :  { %v890_v34 = vmul.f32 %v1133_v39, %v889_v62 }
 0x28f   :  { %v894_v63 = vsel %vm893_vm7, %v1133_v39, %v890_v34 }
 0x290   :  { %v895_v43 = vmul.f32 %v894_v63, %v882_v42 }
 0x292   :  { %v1916_v0 = vperm.slane %v895_v43, 0  ;;  %v929_v47 = vmul.f32 %v895_v43, %v877_v29 }
 0x294   :  { %v930_v45 = vsub.f32 %v883_v44, %v929_v47  ;;  %v927_v46 = vmul.f32 %v1916_v0, %v765_v61  ;;  %v897_v55 = vmul.f32 %v1916_v0, %v1755_v2  ;;  %v898_v49 = vmul.f32 %v1916_v0, %v1759_v4 }
 0x295   :  { %v899_v1 = vmul.f32 %v1916_v0, %v1763_v8  ;;  %v900_v12 = vmul.f32 %v1916_v0, %v1767_v10  ;;  %v901_v61 = vmul.f32 %v1916_v0, %v1771_v56  ;;  %v902_v53 = vmul.f32 %v1916_v0, %v1775_v35 }
 0x296   :  { %v1919_v19 = vperm.slane %v930_v45, 0  ;;  %v903_v8 = vmul.f32 %v1916_v0, %v1779_v5  ;;  %v904_v10 = vmul.f32 %v1916_v0, %v1783_v14  ;;  %v905_v30 = vmul.f32 %v1916_v0, %v1787_v17 }
 0x297   :  { %v906_v35 = vmul.f32 %v1916_v0, %v1791_v20  ;;  %v907_v27 = vmul.f32 %v1916_v0, %v1793_v22  ;;  %v908_v17 = vmul.f32 %v1916_v0, %v1805_v31  ;;  %v909_v32 = vmul.f32 %v1916_v0, %v1821_v41 }
 0x298   :  { %v962_v50 = vadd.f32 %v1919_v19, %v927_v46  ;;  %v932_v51 = vadd.f32 %v1919_v19, %v897_v55  ;;  %v933_v6 = vadd.f32 %v1919_v19, %v898_v49  ;;  %v934_v2 = vadd.f32 %v1919_v19, %v899_v1 }
 0x299   :  { %v935_v4 = vadd.f32 %v1919_v19, %v900_v12  ;;  %v936_v25 = vadd.f32 %v1919_v19, %v901_v61  ;;  %v937_v56 = vadd.f32 %v1919_v19, %v902_v53  ;;  %v938_v29 = vadd.f32 %v1919_v19, %v903_v8 }
 0x29a   :  { %v994_v52 = vmax.f32 %v962_v50, 0.0  ;;  %v964_v37 = vmax.f32 %v932_v51, 0.0  ;;  %v939_v38 = vadd.f32 %v1919_v19, %v904_v10  ;;  %v965_v33 = vmax.f32 %v933_v6, 0.0 }
 0x29b   :  { %v966_v5 = vmax.f32 %v934_v2, 0.0  ;;  %v967_v57 = vmax.f32 %v935_v4, 0.0  ;;  %v940_v14 = vadd.f32 %v1919_v19, %v905_v30  ;;  %v968_v39 = vmax.f32 %v936_v25, 0.0 }
 0x29c   :  { %1026 = vst [vmem:[#allocation2 + $0xf0] sm:$0xff] %v994_v52  ;;  %v941_v20 = vadd.f32 %v1919_v19, %v906_v35  ;;  %v969_v40 = vmax.f32 %v937_v56, 0.0  ;;  %v942_v15 = vadd.f32 %v1919_v19, %v907_v27  ;;  %v970_v62 = vmax.f32 %v938_v29, 0.0 }
 0x29d   :  { %996 = vst [vmem:[#allocation2] sm:$0xff] %v964_v37  ;;  %v910_v22 = vmul.f32 %v1916_v0, %v1837_v24  ;;  %v943_v42 = vadd.f32 %v1919_v19, %v908_v17  ;;  %v971_v34 = vmax.f32 %v939_v38, 0.0  ;;  %v911_v31 = vmul.f32 %v1916_v0, %v1851_v28 }
 0x29e   :  { %997 = vst [vmem:[#allocation2 + $0x8] sm:$0xff] %v965_v33  ;;  %v944_v63 = vadd.f32 %v1919_v19, %v909_v32  ;;  %v972_v43 = vmax.f32 %v940_v14, 0.0  ;;  %v912_v41 = vmul.f32 %v1916_v0, %v1757_v3  ;;  %v973_v47 = vmax.f32 %v941_v20, 0.0 }
 0x29f   :  { %998 = vst [vmem:[#allocation2 + $0x10] sm:$0xff] %v966_v5  ;;  %v945_v44 = vadd.f32 %v1919_v19, %v910_v22  ;;  %v913_v24 = vmul.f32 %v1916_v0, %v1761_v7  ;;  %v946_v45 = vadd.f32 %v1919_v19, %v911_v31  ;;  %v974_v46 = vmax.f32 %v942_v15, 0.0 }
 0x2a0   :  { %999 = vst [vmem:[#allocation2 + $0x18] sm:$0xff] %v967_v57  ;;  %v914_v28 = vmul.f32 %v1916_v0, %v1765_v9  ;;  %v947_v50 = vadd.f32 %v1919_v19, %v912_v41  ;;  %v975_v52 = vmax.f32 %v943_v42, 0.0  ;;  %v915_v3 = vmul.f32 %v1916_v0, %v1769_v11 }
 0x2a1   :  { %1000 = vst [vmem:[#allocation2 + $0x20] sm:$0xff] %v968_v39  ;;  %v948_v55 = vadd.f32 %v1919_v19, %v913_v24  ;;  %v976_v49 = vmax.f32 %v944_v63, 0.0  ;;  %v916_v7 = vmul.f32 %v1916_v0, %v1773_v13  ;;  %v977_v12 = vmax.f32 %v945_v44, 0.0 }
 0x2a2   :  { %1001 = vst [vmem:[#allocation2 + $0x28] sm:$0xff] %v969_v40  ;;  %v949_v1 = vadd.f32 %v1919_v19, %v914_v28  ;;  %v917_v9 = vmul.f32 %v1916_v0, %v1777_v21  ;;  %v950_v61 = vadd.f32 %v1919_v19, %v915_v3  ;;  %v978_v51 = vmax.f32 %v946_v45, 0.0 }
 0x2a3   :  { %1002 = vst [vmem:[#allocation2 + $0x30] sm:$0xff] %v970_v62  ;;  %v918_v11 = vmul.f32 %v1916_v0, %v1781_v60  ;;  %v951_v53 = vadd.f32 %v1919_v19, %v916_v7  ;;  %v979_v6 = vmax.f32 %v947_v50, 0.0  ;;  %v919_v13 = vmul.f32 %v1916_v0, %v1785_v16 }
 0x2a4   :  { %1003 = vst [vmem:[#allocation2 + $0x38] sm:$0xff] %v971_v34  ;;  %v952_v2 = vadd.f32 %v1919_v19, %v917_v9  ;;  %v980_v4 = vmax.f32 %v948_v55, 0.0  ;;  %v920_v21 = vmul.f32 %v1916_v0, %v1789_v18  ;;  %v981_v25 = vmax.f32 %v949_v1, 0.0 }
 0x2a5   :  { %1004 = vst [vmem:[#allocation2 + $0x40] sm:$0xff] %v972_v43  ;;  %v953_v8 = vadd.f32 %v1919_v19, %v918_v11  ;;  %v921_v60 = vmul.f32 %v1916_v0, %v1795_v23  ;;  %v954_v10 = vadd.f32 %v1919_v19, %v919_v13  ;;  %v982_v56 = vmax.f32 %v950_v61, 0.0 }
 0x2a6   :  { %1005 = vst [vmem:[#allocation2 + $0x48] sm:$0xff] %v973_v47  ;;  %v922_v16 = vmul.f32 %v1916_v0, %v1813_v59  ;;  %v955_v30 = vadd.f32 %v1919_v19, %v920_v21  ;;  %v983_v35 = vmax.f32 %v951_v53, 0.0  ;;  %v923_v18 = vmul.f32 %v1916_v0, %v1832_v48 }
 0x2a7   :  { %1006 = vst [vmem:[#allocation2 + $0x50] sm:$0xff] %v974_v46  ;;  %v956_v29 = vadd.f32 %v1919_v19, %v921_v60  ;;  %v984_v37 = vmax.f32 %v952_v2, 0.0  ;;  %v924_v23 = vmul.f32 %v1916_v0, %v1849_v26  ;;  %v985_v33 = vmax.f32 %v953_v8, 0.0 }
 0x2a8   :  { %1007 = vst [vmem:[#allocation2 + $0x58] sm:$0xff] %v975_v52  ;;  %v957_v38 = vadd.f32 %v1919_v19, %v922_v16  ;;  %v925_v59 = vmul.f32 %v1916_v0, %v1868_v36  ;;  %v958_v5 = vadd.f32 %v1919_v19, %v923_v18  ;;  %v986_v57 = vmax.f32 %v954_v10, 0.0 }
 0x2a9   :  { %1008 = vst [vmem:[#allocation2 + $0x60] sm:$0xff] %v976_v49  ;;  %v926_v48 = vmul.f32 %v1916_v0, %v1885_v54  ;;  %v959_v27 = vadd.f32 %v1919_v19, %v924_v23  ;;  %v987_v14 = vmax.f32 %v955_v30, 0.0  ;;  %v928_v26 = vmul.f32 %v1916_v0, %v1905_v58 }
 0x2aa   :  { %1009 = vst [vmem:[#allocation2 + $0x68] sm:$0xff] %v977_v12  ;;  %v960_v39 = vadd.f32 %v1919_v19, %v925_v59  ;;  %v988_v17 = vmax.f32 %v956_v29, 0.0  ;;  %v989_v20 = vmax.f32 %v957_v38, 0.0  ;;  %v990_v32 = vmax.f32 %v958_v5, 0.0 }
 0x2ab   :  { %1010 = vst [vmem:[#allocation2 + $0x70] sm:$0xff] %v978_v51  ;;  %v961_v36 = vadd.f32 %v1919_v19, %v926_v48  ;;  %v963_v40 = vadd.f32 %v1919_v19, %v928_v26  ;;  %v991_v54 = vmax.f32 %v959_v27, 0.0 }
 0x2ac   :  { %1011 = vst [vmem:[#allocation2 + $0x78] sm:$0xff] %v979_v6  ;;  %v992_v15 = vmax.f32 %v960_v39, 0.0 }
 0x2ad   :  { %1012 = vst [vmem:[#allocation2 + $0x80] sm:$0xff] %v980_v4  ;;  %v993_v58 = vmax.f32 %v961_v36, 0.0  ;;  %v995_v0 = vmax.f32 %v963_v40, 0.0 }
 0x2ae   :  { %1013 = vst [vmem:[#allocation2 + $0x88] sm:$0xff] %v981_v25 }
 0x2af   :  { %1014 = vst [vmem:[#allocation2 + $0x90] sm:$0xff] %v982_v56 }
 0x2b0   :  { %1015 = vst [vmem:[#allocation2 + $0x98] sm:$0xff] %v983_v35 }
 0x2b1   :  { %1016 = vst [vmem:[#allocation2 + $0xa0] sm:$0xff] %v984_v37 }
 0x2b2   :  { %1017 = vst [vmem:[#allocation2 + $0xa8] sm:$0xff] %v985_v33 }
 0x2b3   :  { %1018 = vst [vmem:[#allocation2 + $0xb0] sm:$0xff] %v986_v57 }
 0x2b4   :  { %1019 = vst [vmem:[#allocation2 + $0xb8] sm:$0xff] %v987_v14 }
 0x2b5   :  { %1020 = vst [vmem:[#allocation2 + $0xc0] sm:$0xff] %v988_v17 }
 0x2b6   :  { %1021 = vst [vmem:[#allocation2 + $0xc8] sm:$0xff] %v989_v20 }
 0x2b7   :  { %1022 = vst [vmem:[#allocation2 + $0xd0] sm:$0xff] %v990_v32 }
 0x2b8   :  { %1023 = vst [vmem:[#allocation2 + $0xd8] sm:$0xff] %v991_v54 }
 0x2b9   :  { %1024 = vst [vmem:[#allocation2 + $0xe0] sm:$0xff] %v992_v15 }
 0x2ba   :  { %1025 = vst [vmem:[#allocation2 + $0xe8] sm:$0xff] %v993_v58 }
 0x2bb   :  { %1027 = vst [vmem:[#allocation2 + $0xf8] sm:$0xff] %v995_v0 }
 0x2bc   :  { %1040 = dma.vmem_to_hbm [thread:$0]  %s1033_s26, 4096, %s1035_s29, [#allocation3], %s1161_s30, %s1161_s30, %s1162_s0  }
 0x2bd   :  { %1158 = dma.done.wait [#allocation3], 4096  }
 0x2be   :  { %1159 = vsyncadd [#allocation3], 4294963200 }
 0x2bf   :  { %1045 = vsyncpa [#allocation3], 1 }

</bundles_post_ra>
